<compile_context>
chip_gen: v7x
topology: tpu7x:2x2x1
jax: 0.10.0
libtpu: 0.0.40
codegen_flags: <defaults>
</compile_context>

<pallas_src>
import numpy as np
import jax
import jax.numpy as jnp
from jax import lax
from jax.experimental import pallas as pl
from jax.experimental.pallas import tpu as pltpu


def _round_up(x: int, m: int) -> int:
    return (x + m - 1) // m * m


def _vmem_gather_kernel(idx_ref, table_ref, out_ref):
    """Gather rows of a VMEM-resident table into a lane-dense output block.

    idx_ref:   (N_pad,)        int32, SMEM scalar prefetch (flat row indices)
    table_ref: (V_pad, E_pad)  VMEM, full stacked table (resident across steps)
    out_ref:   (R, E_pad)      VMEM output block for this grid step
    """
    R = out_ref.shape[0]
    base = pl.program_id(0) * R

    def copy_row(r):
        row = idx_ref[base + r]                               # scalar SMEM read
        out_ref[pl.ds(r, 1), :] = table_ref[pl.ds(row, 1), :]  # VMEM->VMEM row

    if R <= 32:
        # Small blocks: fully unroll; the LLO scheduler interleaves the
        # scalar reads, dynamic-slice loads and stores.
        for r in range(R):
            copy_row(r)
    else:
        # Large blocks: bounded unroll keeps the instruction stream compact
        # while keeping enough loads in flight.
        def body(r, carry):
            copy_row(r)
            return carry
        lax.fori_loop(0, R, body, 0, unroll=8)


def make_embedder_params(block_masks, embedding_tables, *, table_dtype=None):
    """One-time (model-init) preprocessing: stack tables, compute routing.

    Entirely host-side (numpy) for the routing metadata so it never forces a
    device sync and is safe to call outside any jit trace.
    """
    masks = np.stack([np.asarray(m).astype(np.int32) for m in block_masks])  # (n, bs)
    block_size = int(masks.shape[1])
    # Original module asserts (sum(block_masks) == 1).all()
    assert (masks.sum(axis=0) == 1).all(), \
        "each slot must be owned by exactly one embedding table"
    table_id_per_slot = np.argmax(masks, axis=0).astype(np.int32)            # (bs,)

    vocab_sizes = np.asarray([int(t.shape[0]) for t in embedding_tables],
                             dtype=np.int32)                                 # (n,)
    offsets = np.concatenate([[0], np.cumsum(vocab_sizes)[:-1]]).astype(np.int32)

    E = int(embedding_tables[0].shape[1])
    assert all(int(t.shape[1]) == E for t in embedding_tables)
    # Lane-dense output / table: pad the feature dim to a multiple of 128.
    E_pad = _round_up(E, 128)
    V_total = int(vocab_sizes.sum())
    V_pad = _round_up(max(V_total, 8), 8)

    if table_dtype is None:
        # Preserve the source dtype (review: do NOT force-cast; bf16 halves
        # the only real traffic if the caller opts in).
        table_dtype = jnp.result_type(*[t.dtype for t in embedding_tables])

    stacked = jnp.zeros((V_pad, E_pad), dtype=table_dtype)
    stacked = stacked.at[:V_total, :E].set(
        jnp.concatenate([jnp.asarray(t, dtype=table_dtype)
                         for t in embedding_tables], axis=0))

    return dict(
        block_size=block_size,
        embedding_dim=E,
        padded_dim=E_pad,
        vocab_total=V_total,
        table_id_per_slot=jnp.asarray(table_id_per_slot),
        vocab_sizes=jnp.asarray(vocab_sizes),
        offsets=jnp.asarray(offsets),
        stacked_table=stacked,
    )


def embedder_forward(params, tokens, num_steps, prev_steps):
    """JAX/Pallas equivalent of Embedder.forward.

    tokens:     (B, T) int32 with T == num_steps
    num_steps:  python int (static)
    prev_steps: python int (static)
    """
    assert tokens.ndim == 2
    B, T = tokens.shape
    assert T == num_steps

    block_size = params["block_size"]
    table = params["stacked_table"]
    V_pad, E_pad = table.shape
    E = params["embedding_dim"]

    # Which table owns each of the T positions (absolute step % block_size).
    positions = (prev_steps + jnp.arange(num_steps, dtype=jnp.int32)) % block_size
    tid = params["table_id_per_slot"][positions]                      # (T,)
    vocab_per_pos = params["vocab_sizes"][tid]                        # (T,)

    # Clamp tokens into the owning table's vocab.  PyTorch nn.Embedding would
    # raise on an out-of-range token; the clamp keeps the gather from silently
    # reading a row of the *wrong* table.  (Enable an upstream host-side check
    # if raising behaviour is required.)
    tok = jnp.clip(tokens.astype(jnp.int32), 0, vocab_per_pos[None, :] - 1)
    flat_idx = (params["offsets"][tid][None, :] + tok).reshape(B * T)  # (B*T,)

    out_dtype = table.dtype
    itemsize = jnp.dtype(out_dtype).itemsize
    N = B * T

    # Row-block the flat gather.  Block rows are a multiple of 8 (sublane);
    # aim for >= 2 grid steps so v7x megacore / pipelining has work to split.
    N8 = _round_up(N, 8)
    row_block = min(128, N8)
    if N8 // row_block < 2 and N8 >= 16:
        row_block = max(8, (N8 // 2) // 8 * 8)
    N_pad = _round_up(N8, row_block)
    grid = (N_pad // row_block,)

    idx_padded = jnp.zeros((N_pad,), jnp.int32).at[:N].set(flat_idx)

    table_bytes = V_pad * E_pad * itemsize
    # TODO(synk): very large vocabularies need the HBM-resident DMA-gather
    # fallback instead of the VMEM-resident path.
    assert table_bytes <= 40 * 1024 * 1024, "stacked table too large for VMEM path"
    out_block_bytes = row_block * E_pad * itemsize
    vmem_limit = int(min(48 * 1024 * 1024,
                         max(table_bytes + 4 * out_block_bytes + (2 << 20),
                             8 * 1024 * 1024)))

    cost = pl.CostEstimate(
        flops=0,
        transcendentals=0,
        bytes_accessed=int(table_bytes + N_pad * 4 + N_pad * E_pad * itemsize),
    )

    out_flat = pl.pallas_call(
        _vmem_gather_kernel,
        out_shape=jax.ShapeDtypeStruct((N_pad, E_pad), out_dtype),
        grid_spec=pltpu.PrefetchScalarGridSpec(
            num_scalar_prefetch=1,                     # flat indices -> SMEM
            grid=grid,
            in_specs=[
                # Full table, same block every step -> stays VMEM-resident.
                pl.BlockSpec((V_pad, E_pad), lambda i, idx: (0, 0)),
            ],
            out_specs=pl.BlockSpec((row_block, E_pad), lambda i, idx: (i, 0)),
        ),
        compiler_params=pltpu.CompilerParams(
            dimension_semantics=("parallel",),
            vmem_limit_bytes=vmem_limit,
        ),
        cost_estimate=cost,
    )(idx_padded, table)

    return out_flat[:N, :E].reshape(B, T, E)


if __name__ == "__main__":
    key = jax.random.PRNGKey(0)

    # Embedder config (UniZero-style: some slots -> obs table, last -> act).
    block_size = 5
    max_blocks = 4
    obs_mask = np.array([1, 1, 1, 1, 0], dtype=np.int32)
    act_mask = np.array([0, 0, 0, 0, 1], dtype=np.int32)
    block_masks = [obs_mask, act_mask]

    embedding_dim = 128          # lane-dense output (multiple of 128)
    obs_vocab, act_vocab = 24, 6

    k1, k2, k3 = jax.random.split(key, 3)
    obs_table = jax.random.normal(k1, (obs_vocab, embedding_dim), dtype=jnp.float32)
    act_table = jax.random.normal(k2, (act_vocab, embedding_dim), dtype=jnp.float32)
    embedding_tables = [obs_table, act_table]

    # Precompute (model-init time): stacked padded table, offsets, routing.
    params = make_embedder_params(block_masks, embedding_tables)

    # Forward inputs.
    batch = 2
    num_steps = 8
    prev_steps = 3

    positions = (prev_steps + np.arange(num_steps)) % block_size
    tid_np = np.argmax(np.stack([obs_mask, act_mask]), axis=0)[positions]     # (T,)
    vocab_per_pos = np.where(tid_np == 0, obs_vocab, act_vocab)               # (T,)
    raw = jax.random.randint(k3, (batch, num_steps), 0, 10_000)
    tokens = (raw % jnp.asarray(vocab_per_pos)[None, :]).astype(jnp.int32)

    out = embedder_forward(params, tokens, num_steps, prev_steps)
    out = jax.block_until_ready(out)

    # Pure-JAX reference (same semantics as the PyTorch forward).
    stacked = jnp.concatenate(embedding_tables, axis=0)
    offsets = jnp.array([0, obs_vocab], dtype=jnp.int32)
    flat_idx_2d = offsets[jnp.asarray(tid_np)][None, :] + tokens
    ref = stacked[flat_idx_2d]
    assert out.shape == (batch, num_steps, embedding_dim)
    assert jnp.allclose(out, ref, atol=1e-6), "mismatch vs reference"

    print("KERNEL_OK")
</pallas_src>

<mosaic_0001>
module attributes {stable_mosaic.version = 11 : i64} {
  func.func @_vmem_gather_kernel(%arg0: i32, %arg1: memref<16xi32, #tpu.memory_space<smem>>, %arg2: memref<32x128xf32, #tpu.memory_space<vmem>>, %arg3: memref<8x128xf32, #tpu.memory_space<vmem>>) attributes {dimension_semantics = [#tpu.dimension_semantics<parallel>], iteration_bounds = array<i64: 2>, scalar_prefetch = 1 : i64, scratch_operands = 0 : i64, tpu.core_type = #tpu.core_type<tc>, window_params = [{pipeline_mode = #tpu.pipeline_mode<synchronous>, transform_indices = @transform_0, window_bounds = array<i64: 32, 128>}, {transform_indices = @transform_1, window_bounds = array<i64: 8, 128>}]} {
    %c8_i32 = arith.constant 8 : i32
    %0 = arith.muli %arg0, %c8_i32 : i32
    %c0_i32 = arith.constant 0 : i32
    %1 = arith.addi %0, %c0_i32 : i32
    %2 = arith.index_cast %1 : i32 to index
    %3 = memref.load %arg1[%2] : memref<16xi32, #tpu.memory_space<smem>>
    %4 = arith.index_cast %3 : i32 to index
    %c0 = arith.constant 0 : index
    %5 = vector.load %arg2[%4, %c0] : memref<32x128xf32, #tpu.memory_space<vmem>>, vector<1x128xf32>
    %c0_0 = arith.constant 0 : index
    %c0_1 = arith.constant 0 : index
    %6 = vector.load %arg3[%c0_0, %c0_1] : memref<8x128xf32, #tpu.memory_space<vmem>>, vector<1x128xf32>
    tpu.vector_store %arg3[%c0_0, %c0_1], %5 {strides = array<i32>} : memref<8x128xf32, #tpu.memory_space<vmem>>, vector<1x128xf32>,
    %c1_i32 = arith.constant 1 : i32
    %7 = arith.addi %0, %c1_i32 : i32
    %8 = arith.index_cast %7 : i32 to index
    %9 = memref.load %arg1[%8] : memref<16xi32, #tpu.memory_space<smem>>
    %10 = arith.index_cast %9 : i32 to index
    %c0_2 = arith.constant 0 : index
    %11 = vector.load %arg2[%10, %c0_2] : memref<32x128xf32, #tpu.memory_space<vmem>>, vector<1x128xf32>
    %c1 = arith.constant 1 : index
    %c0_3 = arith.constant 0 : index
    %12 = vector.load %arg3[%c1, %c0_3] : memref<8x128xf32, #tpu.memory_space<vmem>>, vector<1x128xf32>
    tpu.vector_store %arg3[%c1, %c0_3], %11 {strides = array<i32>} : memref<8x128xf32, #tpu.memory_space<vmem>>, vector<1x128xf32>,
    %c2_i32 = arith.constant 2 : i32
    %13 = arith.addi %0, %c2_i32 : i32
    %14 = arith.index_cast %13 : i32 to index
    %15 = memref.load %arg1[%14] : memref<16xi32, #tpu.memory_space<smem>>
    %16 = arith.index_cast %15 : i32 to index
    %c0_4 = arith.constant 0 : index
    %17 = vector.load %arg2[%16, %c0_4] : memref<32x128xf32, #tpu.memory_space<vmem>>, vector<1x128xf32>
    %c2 = arith.constant 2 : index
    %c0_5 = arith.constant 0 : index
    %18 = vector.load %arg3[%c2, %c0_5] : memref<8x128xf32, #tpu.memory_space<vmem>>, vector<1x128xf32>
    tpu.vector_store %arg3[%c2, %c0_5], %17 {strides = array<i32>} : memref<8x128xf32, #tpu.memory_space<vmem>>, vector<1x128xf32>,
    %c3_i32 = arith.constant 3 : i32
    %19 = arith.addi %0, %c3_i32 : i32
    %20 = arith.index_cast %19 : i32 to index
    %21 = memref.load %arg1[%20] : memref<16xi32, #tpu.memory_space<smem>>
    %22 = arith.index_cast %21 : i32 to index
    %c0_6 = arith.constant 0 : index
    %23 = vector.load %arg2[%22, %c0_6] : memref<32x128xf32, #tpu.memory_space<vmem>>, vector<1x128xf32>
    %c3 = arith.constant 3 : index
    %c0_7 = arith.constant 0 : index
    %24 = vector.load %arg3[%c3, %c0_7] : memref<8x128xf32, #tpu.memory_space<vmem>>, vector<1x128xf32>
    tpu.vector_store %arg3[%c3, %c0_7], %23 {strides = array<i32>} : memref<8x128xf32, #tpu.memory_space<vmem>>, vector<1x128xf32>,
    %c4_i32 = arith.constant 4 : i32
    %25 = arith.addi %0, %c4_i32 : i32
    %26 = arith.index_cast %25 : i32 to index
    %27 = memref.load %arg1[%26] : memref<16xi32, #tpu.memory_space<smem>>
    %28 = arith.index_cast %27 : i32 to index
    %c0_8 = arith.constant 0 : index
    %29 = vector.load %arg2[%28, %c0_8] : memref<32x128xf32, #tpu.memory_space<vmem>>, vector<1x128xf32>
    %c4 = arith.constant 4 : index
    %c0_9 = arith.constant 0 : index
    %30 = vector.load %arg3[%c4, %c0_9] : memref<8x128xf32, #tpu.memory_space<vmem>>, vector<1x128xf32>
    tpu.vector_store %arg3[%c4, %c0_9], %29 {strides = array<i32>} : memref<8x128xf32, #tpu.memory_space<vmem>>, vector<1x128xf32>,
    %c5_i32 = arith.constant 5 : i32
    %31 = arith.addi %0, %c5_i32 : i32
    %32 = arith.index_cast %31 : i32 to index
    %33 = memref.load %arg1[%32] : memref<16xi32, #tpu.memory_space<smem>>
    %34 = arith.index_cast %33 : i32 to index
    %c0_10 = arith.constant 0 : index
    %35 = vector.load %arg2[%34, %c0_10] : memref<32x128xf32, #tpu.memory_space<vmem>>, vector<1x128xf32>
    %c5 = arith.constant 5 : index
    %c0_11 = arith.constant 0 : index
    %36 = vector.load %arg3[%c5, %c0_11] : memref<8x128xf32, #tpu.memory_space<vmem>>, vector<1x128xf32>
    tpu.vector_store %arg3[%c5, %c0_11], %35 {strides = array<i32>} : memref<8x128xf32, #tpu.memory_space<vmem>>, vector<1x128xf32>,
    %c6_i32 = arith.constant 6 : i32
    %37 = arith.addi %0, %c6_i32 : i32
    %38 = arith.index_cast %37 : i32 to index
    %39 = memref.load %arg1[%38] : memref<16xi32, #tpu.memory_space<smem>>
    %40 = arith.index_cast %39 : i32 to index
    %c0_12 = arith.constant 0 : index
    %41 = vector.load %arg2[%40, %c0_12] : memref<32x128xf32, #tpu.memory_space<vmem>>, vector<1x128xf32>
    %c6 = arith.constant 6 : index
    %c0_13 = arith.constant 0 : index
    %42 = vector.load %arg3[%c6, %c0_13] : memref<8x128xf32, #tpu.memory_space<vmem>>, vector<1x128xf32>
    tpu.vector_store %arg3[%c6, %c0_13], %41 {strides = array<i32>} : memref<8x128xf32, #tpu.memory_space<vmem>>, vector<1x128xf32>,
    %c7_i32 = arith.constant 7 : i32
    %43 = arith.addi %0, %c7_i32 : i32
    %44 = arith.index_cast %43 : i32 to index
    %45 = memref.load %arg1[%44] : memref<16xi32, #tpu.memory_space<smem>>
    %46 = arith.index_cast %45 : i32 to index
    %c0_14 = arith.constant 0 : index
    %47 = vector.load %arg2[%46, %c0_14] : memref<32x128xf32, #tpu.memory_space<vmem>>, vector<1x128xf32>
    %c7 = arith.constant 7 : index
    %c0_15 = arith.constant 0 : index
    %48 = vector.load %arg3[%c7, %c0_15] : memref<8x128xf32, #tpu.memory_space<vmem>>, vector<1x128xf32>
    tpu.vector_store %arg3[%c7, %c0_15], %47 {strides = array<i32>} : memref<8x128xf32, #tpu.memory_space<vmem>>, vector<1x128xf32>,
    return
  }
  func.func @transform_0(%arg0: i32, %arg1: memref<16xi32, #tpu.memory_space<smem>>) -> (i32, i32) {
    %c0_i32 = arith.constant 0 : i32
    %c0_i32_0 = arith.constant 0 : i32
    %c0_i32_1 = arith.constant 0 : i32
    return %c0_i32, %c0_i32_0 : i32, i32
  }
  func.func @transform_1(%arg0: i32, %arg1: memref<16xi32, #tpu.memory_space<smem>>) -> (i32, i32) {
    %c0_i32 = arith.constant 0 : i32
    %c0_i32_0 = arith.constant 0 : i32
    return %arg0, %c0_i32 : i32, i32
  }
}

</mosaic_0001>

<bundles_post_ra>
// kernel: tpu_custom_call.1
= control target key start
LH: loop header
LB: loop body
LE: loop exit
PB: predicated region body
PF: predicated region fallthrough
CT: control target
= control target key end

     0   :  { %s575_s0 = inlined_call_operand.hbm [shape: s32[16], index: 0, kind: input, shape index: {}]   ;;  %s576_s1 = inlined_call_operand.hbm [shape: f32[32,128], index: 1, kind: input, shape index: {}]   ;;  %s577_s2 = inlined_call_operand.hbm [shape: f32[16,128], index: 2, kind: output, shape index: {}]  }
   0x1   :  { %s300_s11 = scalar_lea.hbm %s575_s0, 16 }
   0x2   :  { %p301_p0 = scmp.ne.s32.totalorder %s575_s0, %s300_s11  ;;  %p304_p1 = scmp.lt.u32.totalorder %s300_s11, %s575_s0 }
   0x4   :  { %p306_p2 = pnand %p304_p1, %p301_p0 }
   0x6   :  { %309 = shalt.err (!%p306_p2)  }
   0x7   :  { %s408_s16 = smov [#allocation3]  }
   0x8   :  { %8 = dma.hbm_to_smem %s575_s0, 16, %s408_s16, [#allocation2] }
   0x9   :  { %382 = dma.done.wait [#allocation2], 16 }
   0xa   :  { %383 = vsyncadd [#allocation2], 4294967280 }
   0xb   :  { %10 = sfence }
   0xc   :  { %11 = vsyncpa [#allocation5], 0 }
   0xd   :  { %12 = vsyncpa [#allocation6], 0 }
   0xe   :  { %14 = vsyncpa [#allocation6 + $0x1], 0  ;;  %s440_s19 = smov 0   ;;  %s442_s20 = smov 0  }
   0xf   :  { %s444_s21 = smov 0   ;;  %s446_s22 = smov 0  }
  0x10 LB: > { %s461_s0 = sadd.s32 4294967295, %s406_s22   ;;  %s236_s23 = sadd.s32 4294967294, %s406_s22   ;;  %s406_s22 = sphi %s446_s22, %s595_s22   ;;  %s402_s21 = sphi %s444_s21, %s594_s21   ;;  %s398_s20 = sphi %s442_s20, %s593_s20   ;;  %s394_s19 = sphi %s440_s19, %s592_s19  }
  0x11   : > { %s465_s24 = sadd.s32 1, %s406_s22   ;;  %s48_s25 = sadd.s32 1, %s402_s21 }
  0x12   : > { %s45_s26 = ssub.s32 %s406_s22, %s465_s24  ;;  %p58_p3 = scmp.ne.s32.totalorder %s402_s21, %s398_s20 }
  0x13   : > { %p46_p4 = scmp.eq.s32.totalorder %s45_s26, 0  ;;  %p59_p5 = scmp.eq.s32.totalorder %s461_s0, 1 }
  0x14   : > { %p64_p6 = scmp.ne.s32.totalorder %s398_s20, %s394_s19  ;;  %p65_p7 = scmp.eq.s32.totalorder %s236_s23, 1 }
  0x15   : > { %s476_s27 = scalar_select %p46_p4, %s402_s21, %s48_s25  }
  0x16   : > { %p478_p8 = por %p59_p5, %p58_p3  ;;  %p482_p9 = por %p65_p7, %p64_p6 }
  0x17   : > { %p237_p10 = scmp.ge.s32.totalorder %s406_s22, 1  ;;  %p72_p11 = scmp.lt.s32.totalorder %s406_s22, 3 }
  0x18   : > { %s582_s28 = scalar_select %p478_p8, 1, 0 }
  0x19   : > { %s583_s29 = scalar_select %p482_p9, 1, 0 }
  0x1a   : > { %p578_p12 = scmp.eq.s32.totalorder %s461_s0, 0  ;;  %p489_p13 = pnand %p237_p10, %p72_p11 }
  0x1b   : > { %s409_s3 = smov [#allocation4]   ;;  %s310_s8 = scalar_lea.hbm %s576_s1, 512 }
  0x1c   : > { %s584_s30 = scalar_select %p489_p13, 1, 0 }
  0x1d   : > { %s84_s4 = sshll.u32 %s409_s3, 4  ;;  %p253_p0 = pneg %p489_p13  ;;  %s85_s4 = int_to_ptr.vmem [resolvable:$true] %s84_s4 }
  0x1e   : > { %p311_p2 = scmp.ne.s32.totalorder %s576_s1, %s310_s8  ;;  %p317_p6 = scmp.lt.u32.totalorder %s310_s8, %s576_s1 }
  0x1f   : > { %p497_p1 = pnand %p578_p12, %p253_p0 }
  0x21   : > { %p312_p3 = pneg %p497_p1 }
  0x23   : > { %p313_p4 = pnand %p312_p3, %p311_p2 }
  0x25   : > { %p314_p5 = pneg %p313_p4 }
  0x27   : > { %p319_p7 = pnand %p317_p6, %p314_p5 }
  0x29   : > { %322 = shalt.err (!%p319_p7)
}
  0x2a   : > { %s323_s13 = scalar_lea.vmem %s85_s4, 512  ;;  %p331_p12 = scmp.lt.s32.totalorder %s85_s4, %s85_s4 }
  0x2b   : > { %p324_p10 = scmp.ne.s32.totalorder %s85_s4, %s323_s13  ;;  %p332_p9 = scmp.lt.s32.totalorder %s323_s13, %s323_s13 }
  0x2d   : > { %p326_p11 = pnand %p324_p10, %p312_p3  ;;  %p333_p8 = por %p332_p9, %p331_p12 }
  0x2f   : > { %p327_p0 = pneg %p326_p11 }
  0x31   : > { %p334_p13 = pnand %p333_p8, %p327_p0 }
  0x33   : > { %337 = shalt.err (!%p334_p13)
}
  0x34   : > { %s410_s14 = smov 128   ;;  %s411_s15 = smov 8  }
  0x35   : > { %256 = dma.hbm_to_vmem [thread:$0]  (!%p497_p1), %s576_s1, 512, %s85_s4, [#allocation5], %s410_s14, %s410_s14, %s411_s15  }
  0x36   : > { %p586_p2 = scmp.ne.s32.totalorder %s584_s30, 0 }
  0x37   : > { %p587_p4 = scmp.eq.s32.totalorder (!%p586_p2), %s461_s0, 0 }
  0x38   : > { %100 = sbr.rel (%p586_p2) target bundleno = 103 (0x67), region = 24 }
  0x3f   : > { %385 = dma.done.wait (%p587_p4), [#allocation5], 512   ;;  %p588_p3 = pmov %p587_p4 }
  0x40   : > { %s581_s18 = sand.u32 1, %s398_s20   ;;  %s242_s23 = sshll.u32 %s461_s0, 3 }
  0x41   : > { %387 = vsyncadd (%p588_p3), [#allocation5], 4294966784  ;;  %s241_s25 = sshll.u32 %s581_s18, 3  ;;  %s116_s26 = sld [smem:[#allocation3 + %s242_s23]] }
  0x42   : > { %s120_s3 = sadd.s32 1, %s242_s23  ;;  %s125_s5 = sadd.s32 2, %s242_s23 }
  0x43   : > { %s121_s4 = sld [smem:[#allocation3 + %s120_s3]]  ;;  %s130_s30 = sadd.s32 3, %s242_s23 }
  0x44   : > { %s126_s6 = sld [smem:[#allocation3 + %s125_s5]]  ;;  %s135_s7 = sadd.s32 4, %s242_s23 }
  0x45   : > { %s131_s8 = sld [smem:[#allocation3 + %s130_s30]]  ;;  %s140_s10 = sadd.s32 5, %s242_s23 }
  0x46   : > { %s136_s9 = sld [smem:[#allocation3 + %s135_s7]]  ;;  %s145_s13 = sadd.s32 6, %s242_s23 }
  0x47   : > { %s117_s11 = scalar_lea.vmem [#allocation4], %s116_s26  ;;  %s141_s12 = sld [smem:[#allocation3 + %s140_s10]] }
  0x48   : > { %v118_v0 = vld [vmem:[%s117_s11] sm:$0x1]  ;;  %s114_s14 = scalar_lea.vmem [#allocation7], %s241_s25  ;;  %s146_s15 = sld [smem:[#allocation3 + %s145_s13]] }
  0x49   : > { %119 = vst [vmem:[%s114_s14] sm:$0x1] %v118_v0  ;;  %s150_s16 = sadd.s32 7, %s242_s23  ;;  %s122_s17 = scalar_lea.vmem [#allocation4], %s121_s4 }
  0x4a   : > { %v123_v1 = vld [vmem:[%s122_s17] sm:$0x1]  ;;  %s127_s18 = scalar_lea.vmem [#allocation4], %s126_s6  ;;  %s151_s3 = sld [smem:[#allocation3 + %s150_s16]] }
  0x4b   : > { %v128_v2 = vld [vmem:[%s127_s18] sm:$0x1]  ;;  %124 = vst [vmem:[%s114_s14 + $0x1] sm:$0x1] %v123_v1  ;;  %s132_s5 = scalar_lea.vmem [#allocation4], %s131_s8  ;;  %s244_s26 = sshll.u32 %s461_s0, 7 }
  0x4c   : > { %129 = vst [vmem:[%s114_s14 + $0x2] sm:$0x1] %v128_v2  ;;  %v133_v3 = vld [vmem:[%s132_s5] sm:$0x1]  ;;  %s137_s30 = scalar_lea.vmem [#allocation4], %s136_s9  ;;  %s169_s25 = sshll.u32 %s114_s14, 4  ;;  %s533_s25 = int_to_ptr.vmem [resolvable:$true] %s169_s25 }
  0x4d   : > { %v138_v4 = vld [vmem:[%s137_s30] sm:$0x1]  ;;  %134 = vst [vmem:[%s114_s14 + $0x3] sm:$0x1] %v133_v3  ;;  %s142_s7 = scalar_lea.vmem [#allocation4], %s141_s12  ;;  %s531_s6 = scalar_lea.hbm %s577_s2, %s244_s26 }
  0x4e   : > { %139 = vst [vmem:[%s114_s14 + $0x4] sm:$0x1] %v138_v4  ;;  %v143_v5 = vld [vmem:[%s142_s7] sm:$0x1]  ;;  %s147_s23 = scalar_lea.vmem [#allocation4], %s146_s15  ;;  %s589_s8 = sand.u32 1, %s398_s20  }
  0x4f   : > { %144 = vst [vmem:[%s114_s14 + $0x5] sm:$0x1] %v143_v5  ;;  %v148_v6 = vld [vmem:[%s147_s23] sm:$0x1]  ;;  %s156_s9 = scalar_lea.sflag [#allocation6], %s589_s8  ;;  %s338_s10 = scalar_lea.vmem %s533_s25, 128 }
  0x50   : > { %149 = vst [vmem:[%s114_s14 + $0x6] sm:$0x1] %v148_v6  ;;  %s152_s0 = scalar_lea.vmem [#allocation4], %s151_s3  ;;  %p339_p8 = scmp.ne.s32.totalorder %s533_s25, %s338_s10 }
  0x51   : > { %v153_v7 = vld [vmem:[%s152_s0] sm:$0x1]  ;;  %p590_p9 = scmp.ne.s32.totalorder %s582_s28, 0  ;;  %s412_s11 = smov [#allocation7]  }
  0x52   : > { %154 = vst [vmem:[%s114_s14 + $0x7] sm:$0x1] %v153_v7  ;;  %s342_s12 = sshll.u32 %s412_s11, 4  ;;  %s343_s12 = int_to_ptr.vmem [resolvable:$false] %s342_s12 }
  0x53   : > { %p340_p12 = pnand %p339_p8, %p590_p9  ;;  %s344_s13 = scalar_lea.vmem %s343_s12, 256 }
  0x54   : > { %p345_p1 = scmp.lt.s32.totalorder %s533_s25, %s343_s12  ;;  %p346_p5 = scmp.lt.s32.totalorder %s344_s13, %s338_s10 }
  0x55   : > { %p341_p13 = pneg %p340_p12 }
  0x56   : > { %p347_p6 = por %p346_p5, %p345_p1 }
  0x58   : > { %p348_p7 = pnand %p347_p6, %p341_p13 }
  0x5a   : > { %351 = shalt.err (!%p348_p7)
}
  0x5b   : > { %s352_s14 = scalar_lea.hbm %s531_s6, 128  ;;  %s356_s17 = scalar_lea.hbm %s577_s2, 256 }
  0x5c   : > { %p353_p10 = scmp.ne.s32.totalorder %s531_s6, %s352_s14  ;;  %p357_p2 = scmp.lt.u32.totalorder %s531_s6, %s577_s2 }
  0x5d   : > { %p358_p4 = scmp.lt.u32.totalorder %s356_s17, %s352_s14  ;;  %p360_p8 = scmp.lt.u32.totalorder %s352_s14, %s531_s6 }
  0x5e   : > { %p354_p11 = pnand %p353_p10, %p590_p9 }
  0x5f   : > { %p359_p3 = por %p358_p4, %p357_p2 }
  0x60   : > { %p355_p0 = pneg %p354_p11 }
  0x61   : > { %p361_p12 = por %p360_p8, %p359_p3 }
  0x63   : > { %p362_p13 = pnand %p361_p12, %p355_p0 }
  0x65   : > { %365 = shalt.err (!%p362_p13)
}
  0x66   : > { %251 = dma.vmem_to_hbm [thread:$0]  (%p590_p9), %s533_s25, 128, %s531_s6, %s156_s9  }
  0x67 PF: > { %p263_p1 = scmp.ge.s32.totalorder %s406_s22, 2  ;;  %s181_s30 = sand.u32 1, %s394_s19  }
  0x68   : > { %p591_p5 = scmp.ne.s32.totalorder %s583_s29, 0  ;;  %s182_s26 = scalar_lea.sflag [#allocation6], %s181_s30 }
  0x6a   : > { %p258_p6 = pnand %p263_p1, %p591_p5 }
  0x6c   : > { %389 = dma.done.wait (!%p258_p6), %s182_s26, 128  }
  0x6d   : > { %391 = vsyncadd (!%p258_p6), %s182_s26, 4294967168  ;;  %p17_p7 = scmp.ge.s32.totalorder %s465_s24, 4   ;;  %s592_s19 = smov %s398_s20 }
  0x6e   : > { %s593_s20 = smov %s402_s21  ;;  %s594_s21 = smov %s476_s27 }
  0x6f   : > { %s595_s22 = smov %s465_s24  ;;  %19 = sbr.rel (!%p17_p7) target bundleno = 16 (0x10), region = 69 }
  0x76   :  { %187 = vsyncpa [#allocation5], 1 }
  0x77   :  { %189 = vsyncpa [#allocation5 + $0x1], 1 }
  0x78   :  { %190 = vsyncpa [#allocation6], 1 }
  0x79   :  { %192 = vsyncpa [#allocation6 + $0x1], 1 }

</bundles_post_ra>
